<compile_context>
chip_gen: v7x
topology: tpu7x:2x2x1
jax: 0.10.0
libtpu: 0.0.40
codegen_flags: <defaults>
</compile_context>

<pallas_src>
import jax
import jax.numpy as jnp
from jax.experimental import pallas as pl
from jax.experimental.pallas import tpu as pltpu


def _linear_kernel_bias(x_ref, w_ref, b_ref, out_ref):
    # x_ref  : (K, TL)  input dtype (cast to bf16 on the VPU below)
    # w_ref  : (O, K)   bf16, resident (constant block index)
    # b_ref  : (O, 1)   f32, resident
    # out_ref: (O, TL)  out_dtype
    acc = jnp.dot(w_ref[...], x_ref[...].astype(jnp.bfloat16),
                  preferred_element_type=jnp.float32)
    out_ref[...] = (acc + b_ref[...]).astype(out_ref.dtype)   # (O,1) broadcasts over lanes


def _linear_kernel_nobias(x_ref, w_ref, out_ref):
    acc = jnp.dot(w_ref[...], x_ref[...].astype(jnp.bfloat16),
                  preferred_element_type=jnp.float32)
    out_ref[...] = acc.astype(out_ref.dtype)


def _round_up(v, m):
    return ((v + m - 1) // m) * m


def linear_kernel_forward(x_unf, w, b, out_dtype=jnp.float32):
    """JAX/Pallas equivalent of LinearKernel.forward(x_unf, w, b).

    x_unf: (N, K, L)  (K = C*kh*kw, L = number of unfold columns), any float dtype
    w    : (O, C, kh, kw) or (O, K)
    b    : (O, 1), (O,), or None
    returns (N, O, L) in out_dtype (default float32), matching the PyTorch module.
    """
    N, K, L = x_unf.shape
    O = w.shape[0]
    w_flat = jnp.asarray(w).reshape(O, -1)
    assert w_flat.shape[1] == K, "w must flatten to (O, K)"
    w_bf = w_flat.astype(jnp.bfloat16)          # tiny one-time cast; resident in VMEM

    x_bytes = jnp.dtype(x_unf.dtype).itemsize
    out_bytes = jnp.dtype(out_dtype).itemsize

    # Lane-tile size: multiple of 128 (unmasked stores except the last partial tile),
    # capped so the double-buffered working set stays ~<= 8 MiB.
    budget = 8 * 1024 * 1024
    denom = 2 * (K * x_bytes + O * 4)
    tl_cap = max(128, ((budget - 4 * O * K) // denom) // 128 * 128)
    if L <= 128:
        TL = L                                  # block == full dim (allowed, masked store)
    else:
        TL = min(tl_cap, 2048, (L // 128) * 128)

    grid = (N, pl.cdiv(L, TL))

    cost = pl.CostEstimate(
        flops=2 * N * O * K * L,
        transcendentals=0,
        bytes_accessed=(N * K * L * x_bytes + O * K * 2
                        + (O * 4 if b is not None else 0)
                        + N * O * L * out_bytes),
    )
    cparams = pltpu.CompilerParams(
        dimension_semantics=("parallel", "parallel"))   # v7x: shards steps over both TCs

    x_spec = pl.BlockSpec((None, K, TL), lambda n, lt: (n, 0, lt))
    w_spec = pl.BlockSpec((O, K), lambda n, lt: (0, 0))             # resident
    out_spec = pl.BlockSpec((None, O, TL), lambda n, lt: (n, 0, lt))
    out_shape = jax.ShapeDtypeStruct((N, O, L), out_dtype)

    if b is None:
        # Trace-time specialization: no bias ref, no resident DMA, no add.
        return pl.pallas_call(
            _linear_kernel_nobias,
            out_shape=out_shape,
            grid_spec=pltpu.PrefetchScalarGridSpec(
                num_scalar_prefetch=0, grid=grid,
                in_specs=[x_spec, w_spec], out_specs=out_spec),
            compiler_params=cparams,
            cost_estimate=cost,
        )(x_unf, w_bf)

    b_arr = jnp.asarray(b, jnp.float32).reshape(O, 1)
    b_spec = pl.BlockSpec((O, 1), lambda n, lt: (0, 0))              # resident
    return pl.pallas_call(
        _linear_kernel_bias,
        out_shape=out_shape,
        grid_spec=pltpu.PrefetchScalarGridSpec(
            num_scalar_prefetch=0, grid=grid,
            in_specs=[x_spec, w_spec, b_spec], out_specs=out_spec),
        compiler_params=cparams,
        cost_estimate=cost,
    )(x_unf, w_bf, b_arr)


if __name__ == "__main__":
    key = jax.random.PRNGKey(0)
    k1, k2, k3 = jax.random.split(key, 3)

    # Shapes implied by the module: x_unf = F.unfold(x) of an NCHW image.
    # x: (2, 4, 16, 16), 3x3 kernel, stride 1, no padding -> K=36, L=14*14=196.
    N, C, kh, kw, O = 2, 4, 3, 3, 8
    H = W = 16
    Hout, Wout = H - kh + 1, W - kw + 1
    K, L = C * kh * kw, Hout * Wout

    x_unf = jax.random.normal(k1, (N, K, L), dtype=jnp.float32)
    w = 0.1 * jax.random.normal(k2, (O, C, kh, kw), dtype=jnp.float32)
    b = 0.1 * jax.random.normal(k3, (O, 1), dtype=jnp.float32)

    out = jax.block_until_ready(linear_kernel_forward(x_unf, w, b))
    assert out.shape == (N, O, L) and out.dtype == jnp.float32

    w_flat = w.reshape(O, -1)
    # Reference 1: same bf16 operand precision as the kernel, f32 accumulate -> tight match.
    x_bf = x_unf.astype(jnp.bfloat16).astype(jnp.float32)
    w_bfr = w_flat.astype(jnp.bfloat16).astype(jnp.float32)
    ref_bf = jnp.einsum("nkl,ok->nol", x_bf, w_bfr) + b[None, :, :]
    assert jnp.allclose(out, ref_bf, rtol=1e-3, atol=1e-3)

    # Reference 2: full-f32 PyTorch semantics, loose bf16-operand tolerance.
    ref_f32 = jnp.einsum("nkl,ok->nol", x_unf, w_flat) + b[None, :, :]
    assert jnp.allclose(out, ref_f32, rtol=3e-2, atol=3e-2)

    # b=None path (module skips the bias add) -> bias-free kernel variant.
    out_nb = jax.block_until_ready(linear_kernel_forward(x_unf, w, None))
    ref_nb = jnp.einsum("nkl,ok->nol", x_bf, w_bfr)
    assert jnp.allclose(out_nb, ref_nb, rtol=1e-3, atol=1e-3)

    print("KERNEL_OK")
</pallas_src>

<mosaic_0001>
module attributes {stable_mosaic.version = 11 : i64} {
  func.func @_linear_kernel_bias(%arg0: i32, %arg1: i32, %arg2: memref<1x36x128xf32, #tpu.memory_space<vmem>>, %arg3: memref<8x36xbf16, #tpu.memory_space<vmem>>, %arg4: memref<8x1xf32, #tpu.memory_space<vmem>>, %arg5: memref<1x8x128xf32, #tpu.memory_space<vmem>>) attributes {dimension_semantics = [#tpu.dimension_semantics<parallel>, #tpu.dimension_semantics<parallel>], iteration_bounds = array<i64: 2, 2>, scalar_prefetch = 0 : i64, scratch_operands = 0 : i64, tpu.core_type = #tpu.core_type<tc>, window_params = [{transform_indices = @transform_0, window_bounds = array<i64: 1, 36, 128>}, {pipeline_mode = #tpu.pipeline_mode<synchronous>, transform_indices = @transform_1, window_bounds = array<i64: 8, 36>}, {pipeline_mode = #tpu.pipeline_mode<synchronous>, transform_indices = @transform_2, window_bounds = array<i64: 8, 1>}, {transform_indices = @transform_3, window_bounds = array<i64: 1, 8, 128>}]} {
    %c0 = arith.constant 0 : index
    %c0_0 = arith.constant 0 : index
    %0 = vector.load %arg3[%c0, %c0_0] : memref<8x36xbf16, #tpu.memory_space<vmem>>, vector<8x36xbf16>
    %c0_1 = arith.constant 0 : index
    %c0_2 = arith.constant 0 : index
    %c0_3 = arith.constant 0 : index
    %1 = vector.load %arg2[%c0_1, %c0_2, %c0_3] : memref<1x36x128xf32, #tpu.memory_space<vmem>>, vector<1x36x128xf32>
    %2 = vector.shape_cast %1 : vector<1x36x128xf32> to vector<36x128xf32>
    %3 = arith.truncf %2 : vector<36x128xf32> to vector<36x128xbf16>
    %cst = arith.constant dense<0.000000e+00> : vector<8x128xf32>
    %4 = tpu.matmul %0, %3, %cst {dimension_numbers = #tpu.dot_dimension_numbers<[1], [0], [0], [1], [0, 0, 1, 1], [], []>} : vector<8x36xbf16>, vector<36x128xbf16>, vector<8x128xf32> -> vector<8x128xf32>
    %c0_4 = arith.constant 0 : index
    %c0_5 = arith.constant 0 : index
    %5 = vector.load %arg4[%c0_4, %c0_5] : memref<8x1xf32, #tpu.memory_space<vmem>>, vector<8x1xf32>
    %6 = vector.broadcast %5 : vector<8x1xf32> to vector<8x128xf32>
    %7 = arith.addf %4, %6 : vector<8x128xf32>
    %c0_6 = arith.constant 0 : index
    %c0_7 = arith.constant 0 : index
    %c0_8 = arith.constant 0 : index
    %8 = vector.load %arg5[%c0_6, %c0_7, %c0_8] : memref<1x8x128xf32, #tpu.memory_space<vmem>>, vector<1x8x128xf32>
    %9 = vector.shape_cast %8 : vector<1x8x128xf32> to vector<8x128xf32>
    %10 = vector.shape_cast %7 : vector<8x128xf32> to vector<1x8x128xf32>
    tpu.vector_store %arg5[%c0_6, %c0_7, %c0_8], %10 {strides = array<i32>} : memref<1x8x128xf32, #tpu.memory_space<vmem>>, vector<1x8x128xf32>,
    return
  }
  func.func @transform_0(%arg0: i32, %arg1: i32) -> (i32, i32, i32) {
    %c0_i32 = arith.constant 0 : i32
    %c0_i32_0 = arith.constant 0 : i32
    return %arg0, %c0_i32, %arg1 : i32, i32, i32
  }
  func.func @transform_1(%arg0: i32, %arg1: i32) -> (i32, i32) {
    %c0_i32 = arith.constant 0 : i32
    %c0_i32_0 = arith.constant 0 : i32
    %c0_i32_1 = arith.constant 0 : i32
    return %c0_i32, %c0_i32_0 : i32, i32
  }
  func.func @transform_2(%arg0: i32, %arg1: i32) -> (i32, i32) {
    %c0_i32 = arith.constant 0 : i32
    %c0_i32_0 = arith.constant 0 : i32
    %c0_i32_1 = arith.constant 0 : i32
    return %c0_i32, %c0_i32_0 : i32, i32
  }
  func.func @transform_3(%arg0: i32, %arg1: i32) -> (i32, i32, i32) {
    %c0_i32 = arith.constant 0 : i32
    %c0_i32_0 = arith.constant 0 : i32
    return %arg0, %c0_i32, %arg1 : i32, i32, i32
  }
}

</mosaic_0001>

<bundles_post_ra>
// kernel: tpu_custom_call.1
= control target key start
LH: loop header
LB: loop body
LE: loop exit
PB: predicated region body
PF: predicated region fallthrough
CT: control target
= control target key end

     0   :  { %8 = vsyncpa [#allocation4], 0  ;;  %s778_s0 = inlined_call_operand.vmem [shape: f32[2,36,196], index: 0, kind: input, shape index: {}]   ;;  %s779_s1 = inlined_call_operand.vmem [shape: bf16[8,36], index: 1, kind: input, shape index: {}]   ;;  %s780_s2 = inlined_call_operand.vmem [shape: f32[8,1], index: 2, kind: input, shape index: {}]   ;;  %s781_s3 = inlined_call_operand.hbm [shape: f32[2,8,196], index: 3, kind: output, shape index: {}]  }
   0x1   :  { %10 = vsyncpa [#allocation4 + $0x1], 0  ;;  %s623_s12 = smov 0   ;;  %s625_s13 = smov 0  }
   0x2   :  { %s627_s14 = smov 0   ;;  %s629_s15 = smov 0  }
   0x3   :  { %s631_s16 = smov 0   ;;  %s633_s17 = smov 0  }
   0x4   :  { %s635_s18 = smov 0   ;;  %s637_s19 = smov 0  }
   0x5 LB: > { %s398_s20 = sadd.s32 4294967295, %s597_s19   ;;  %s399_s21 = sadd.s32 4294967294, %s597_s19   ;;  %s597_s19 = sphi %s637_s19, %s16_s19   ;;  %s593_s18 = sphi %s635_s18, %s791_s18   ;;  %s589_s17 = sphi %s633_s17, %s790_s17   ;;  %s585_s16 = sphi %s631_s16, %s789_s16   ;;  %s581_s15 = sphi %s629_s15, %s788_s15   ;;  %s577_s14 = sphi %s627_s14, %s787_s14   ;;  %s573_s13 = sphi %s625_s13, %s786_s13   ;;  %s569_s12 = sphi %s623_s12, %s785_s12  }
   0x6   : > { %s25_s22 = sadd.s32 1, %s589_s17  ;;  %s28_s23 = sadd.s32 1, %s593_s18 }
   0x7   : > { %p26_p0 = scmp.ge.s32.totalorder %s25_s22, 2  ;;  %p44_p1 = scmp.ne.s32.totalorder %s577_s14, %s573_s13 }
   0x8   : > { %p45_p2 = scmp.eq.s32.totalorder %s597_s19, 0  ;;  %p118_p5 = scmp.eq.s32.totalorder %s398_s20, 3 }
   0x9   : > { %s793_s22 = smov (%p26_p0, %s25_s22), 0  ;;  %s795_s23 = smov (!%p26_p0, %s28_s23), %s593_s18 }
   0xa   : > { %s33_s24 = ssub.s32 %s589_s17, %s793_s22  ;;  %p675_p3 = por %p45_p2, %p44_p1 }
   0xb   : > { %p30_p4 = scmp.ge.s32.totalorder %s795_s23, 2  ;;  %p123_p6 = scmp.ne.s32.totalorder %s573_s13, %s569_s12 }
   0xc   : > { %p124_p7 = scmp.eq.s32.totalorder %s399_s21, 3  ;;  %p683_p8 = por %p118_p5, %p44_p1 }
   0xd   : > { %s797_s23 = smov (%p30_p4, %s795_s23), 0  ;;  %s37_s30 = sadd.s32 1, %s577_s14 }
   0xe   : > { %p687_p9 = por %p124_p7, %p123_p6  ;;  %s32_s28 = ssub.s32 %s593_s18, %s797_s23 }
   0xf   : > { %s34_s29 = sor.u32 %s33_s24, %s32_s28  ;;  %p401_p11 = scmp.ge.s32.totalorder %s597_s19, 4 }
  0x10   : > { %p35_p10 = scmp.eq.s32.totalorder %s34_s29, 0 }
  0x11   : > { %146 = sbr.rel (%p401_p11) target bundleno = 34 (0x22), region = 24 }
  0x12   : > { %s695_s4 = scalar_select %p35_p10, %s577_s14, %s37_s30  }
  0x18   : > { %149 = sbr.rel (!%p675_p3) target bundleno = 34 (0x22), region = 28  ;;  %s151_s5 = sand.u32 (%p675_p3), 1, %s577_s14  }
  0x19   : > { %s426_s6 = smul.u32 (%p675_p3), 10, %s593_s18 }
  0x1a   : > { %s425_s7 = smul.u32 (%p675_p3), 40, %s151_s5 }
  0x1b   : > { %s155_s8 = sadd.s32 (%p675_p3), %s589_s17, %s426_s6 }
  0x1c   : > { %s402_s9 = sshll.u32 (%p675_p3), %s155_s8, 3  ;;  %s153_s21 = scalar_lea.vmem (%p675_p3), [#allocation2], %s425_s7 }
  0x1d   : > { %s157_s20 = scalar_lea.vmem (%p675_p3), %s778_s0, %s402_s9 }
  0x1e   : > { %v193_v0 = vld [vmem:[%s157_s20] sm:$0xff] (%p675_p3)  ;;  %v195_v1 = vld [vmem:[%s157_s20 + $0x10] sm:$0xff] (%p675_p3) }
  0x1f   : > { %v197_v2 = vld [vmem:[%s157_s20 + $0x20] sm:$0xff]  ;;  %194 = vst [vmem:[%s153_s21] sm:$0xff] %v193_v0  ;;  %196 = vst [vmem:[%s153_s21 + $0x8] sm:$0xff] %v195_v1  ;;  %v199_v3 = vld [vmem:[%s157_s20 + $0x30] sm:$0xff] }
  0x20   : > { %198 = vst [vmem:[%s153_s21 + $0x10] sm:$0xff] %v197_v2  ;;  %v201_v4 = vld [vmem:[%s157_s20 + $0x40] sm:$0xff]  ;;  %200 = vst [vmem:[%s153_s21 + $0x18] sm:$0xff] %v199_v3 }
  0x21   : > { %202 = vst [vmem:[%s153_s21 + $0x20] sm:$0xff] %v201_v4 }
  0x22 PF: > { %p403_p12 = scmp.ge.s32.totalorder %s597_s19, 1  ;;  %p207_p13 = scmp.lt.s32.totalorder %s597_s19, 5 }
  0x24   : > { %p208_p0 = pnand %p403_p12, %p207_p13 }
  0x25   : > { %s709_s24 = sand.u32 (!%p208_p0), 1, %s573_s13   ;;  %v599_v5 = vmov (!%p208_p0), 0.0   ;;  %vm600_vm0 = vmmov (!%p208_p0), 0   ;;  %v247_v6 = vld [vmem:[%s780_s2] sm:$0xff] (!%p208_p0)  ;;  %v601_v7 = vmov (!%p208_p0), 0   ;;  %vm257_vm1 = vcmask (!%p208_p0), 1041408  }
  0x26   : > { %211 = sbr.rel (%p208_p0) target bundleno = 284 (0x11c), region = 66  ;;  %415 = vmatprep.subr.bf16.mxu0 (!%p208_p0), %v599_v5  ;;  %421 = vmatprep.mubr.msk.bf16.mxu0 (!%p208_p0), %vm600_vm0, %v599_v5  ;;  %v238_v17 = vld [vmem:[%s779_s1] sm:$0xf] (!%p208_p0)  ;;  %vm253_vm2 = vcmask (!%p208_p0), 293888   ;;  %s404_s7 = sshll.u32 (!%p208_p0), %s709_s24, 3 }
  0x27   : > { %s427_s25 = smul.u32 (!%p208_p0), 40, %s709_s24  ;;  %502 = vset.pattern.permute.xlu0 (!%p208_p0), %v601_v7  ;;  %s407_s8 = sshll.u32 (!%p208_p0), %s585_s16, 1 }
  0x28   : > { %250 = vperm.xlu0 (!%p208_p0), %502, %v247_v6   ;;  %s314_s9 = sadd.s32 (!%p208_p0), %s581_s15, %s407_s8  ;;  %s236_s11 = scalar_lea.vmem (!%p208_p0), [#allocation3], %s404_s7 }
  0x29   : > { %s216_s30 = scalar_lea.vmem (!%p208_p0), [#allocation2], %s427_s25  ;;  %s408_s10 = sshll.u32 (!%p208_p0), %s314_s9, 7 }
  0x2a   : > { %v239_v8 = vld [vmem:[%s216_s30] sm:$0xff] (!%p208_p0)  ;;  %v240_v9 = vld [vmem:[%s216_s30 + $0x8] sm:$0xff] (!%p208_p0)  ;;  %v241_v10 = vld [vmem:[%s216_s30 + $0x10] sm:$0xff] (!%p208_p0)  ;;  %s318_s20 = sshll.u32 (!%p208_p0), %s236_s11, 4  ;;  %s724_s28 = scalar_lea.hbm (!%p208_p0), %s781_s3, %s408_s10  ;;  %s726_s20 = int_to_ptr.vmem [resolvable:$true] %s318_s20 }
  0x2b   : > { %v244_v11 = vpack.c.bf16 (!%p208_p0), %v240_v9, %v239_v8  ;;  %v242_v12 = vld [vmem:[%s216_s30 + $0x18] sm:$0xff] (!%p208_p0)  ;;  %v243_v13 = vld [vmem:[%s216_s30 + $0x20] sm:$0xf] (!%p208_p0)  ;;  %s303_s15 = scalar_lea.sflag (!%p208_p0), [#allocation4], %s709_s24  ;;  %s503_s16 = scalar_lea.vmem (!%p208_p0), %s726_s20, 128 }
  0x2c   : > { %v245_v14 = vpack.c.bf16 (!%p208_p0), %v242_v12, %v241_v10  ;;  %v246_v15 = vpack.c.bf16 (!%p208_p0), %v243_v13, %v243_v13  ;;  %p504_p1 = scmp.ne.s32.totalorder (!%p208_p0), %s726_s20, %s503_s16  ;;  %s602_s29 = smov (!%p208_p0), [#allocation3]  }
  0x2d   : > { %416 = vmatpush3.bf16.msra.mxu0 %v244_v11  ;;  %s507_s30 = sshll.u32 %s602_s29, 4  ;;  %s508_s30 = int_to_ptr.vmem [resolvable:$false] %s507_s30 }
  0x2e   : > { %417 = vmatprep.subr.bf16.mxu0 %v599_v5  ;;  %v259_v16 = vsel %vm257_vm1, %v246_v15, 0  ;;  %p505_p2 = pnand %p504_p1, %p683_p8  ;;  %s509_s5 = scalar_lea.vmem %s508_s30, 256 }
  0x2f   : > { %p510_p4 = scmp.lt.s32.totalorder %s726_s20, %s508_s30  ;;  %p511_p5 = scmp.lt.s32.totalorder %s509_s5, %s503_s16 }
  0x30   : > { %p506_p3 = pneg %p505_p2 }
  0x31   : > { %418 = vmatpush3.bf16.msra.mxu0 %v245_v14  ;;  %p512_p6 = por %p511_p5, %p510_p4 }
  0x32   : > { %419 = vmatprep.subr.bf16.mxu0 %v599_v5 }
  0x33   : > { %p513_p7 = pnand %p512_p6, %p506_p3 }
  0x35   : > { %420 = vmatpush3.bf16.msra.mxu0 %v259_v16 }
  0x38   : > { %422 = vmatmul.mubr.msk.bf16.vlgmr.msra.gmra.mrb[0].mxu0 %vm253_vm2, %v238_v17 }
  0xa7   : > { %v251_v18 = vpop.permute.xlu0 %250 }
 0x10b   : > { %v295_v19 = vpop.f32.mrb[0].mxu0 }
 0x10c   : > { %v296_v20 = vadd.f32 %v295_v19, %v251_v18  ;;  %v423_v21 = vpop.f32.mrb[1].mxu0 }
 0x10d   : > { %v298_v22 = vpop.f32.mrb[2].mxu0 }
 0x10e   : > { %301 = vst [vmem:[%s236_s11] sm:$0xff] %v296_v20  ;;  %v424_v23 = vpop.f32.mrb[3].mxu0 }
 0x10f   : > { %516 = shalt.err (!%p513_p7)
}
 0x110   : > { %s517_s24 = scalar_lea.hbm %s724_s28, 128  ;;  %s521_s8 = scalar_lea.hbm %s781_s3, 512 }
 0x111   : > { %p518_p10 = scmp.ne.s32.totalorder %s724_s28, %s517_s24  ;;  %p522_p13 = scmp.lt.u32.totalorder %s724_s28, %s781_s3 }
 0x112   : > { %p523_p0 = scmp.lt.u32.totalorder %s521_s8, %s517_s24  ;;  %p525_p2 = scmp.lt.u32.totalorder %s517_s24, %s724_s28 }
 0x113   : > { %p519_p11 = pnand %p518_p10, %p683_p8 }
 0x114   : > { %p524_p1 = por %p523_p0, %p522_p13 }
 0x115   : > { %p520_p12 = pneg %p519_p11 }
 0x116   : > { %p526_p3 = por %p525_p2, %p524_p1 }
 0x118   : > { %p527_p4 = pnand %p526_p3, %p520_p12 }
 0x11a   : > { %530 = shalt.err (!%p527_p4)
}
 0x11b   : > { %428 = dma.vmem_to_hbm [thread:$0]  (%p683_p8), %s726_s20, 128, %s724_s28, %s303_s15  }
 0x11c PF: > { %p434_p5 = scmp.ge.s32.totalorder %s597_s19, 2  ;;  %s330_s11 = sand.u32 1, %s569_s12  }
 0x11d   : > { %s331_s21 = scalar_lea.sflag [#allocation4], %s330_s11 }
 0x11e   : > { %p431_p6 = pnand %p434_p5, %p687_p9 }
 0x120   : > { %564 = dma.done.wait (!%p431_p6), %s331_s21, 128  }
 0x121   : > { %566 = vsyncadd (!%p431_p6), %s331_s21, 4294967168  ;;  %s16_s19 = sadd.s32 1, %s597_s19   ;;  %s785_s12 = smov %s573_s13 }
 0x122   : > { %p13_p7 = scmp.ge.s32.totalorder %s16_s19, 6   ;;  %s786_s13 = smov %s577_s14 }
 0x123   : > { %s787_s14 = smov %s695_s4  ;;  %s788_s15 = smov %s589_s17 }
 0x124   : > { %s789_s16 = smov %s593_s18  ;;  %s790_s17 = smov %s793_s22 }
 0x125   : > { %s791_s18 = smov %s797_s23  ;;  %15 = sbr.rel (!%p13_p7) target bundleno = 5 (0x5), region = 110 }
 0x12c   :  { %336 = vsyncpa [#allocation4], 1 }
 0x12d   :  { %338 = vsyncpa [#allocation4 + $0x1], 1 }

</bundles_post_ra>
